<compile_context>
chip_gen: v6e
topology: v6e:2x2x1
jax: 0.10.0
libtpu: 0.0.40
codegen_flags: <defaults>
</compile_context>

<pallas_src>
import functools
import math

import jax
import jax.numpy as jnp
from jax import lax
from jax.experimental import pallas as pl
from jax.experimental.pallas import tpu as pltpu


# ---------------------------------------------------------------------------
# helpers
# ---------------------------------------------------------------------------
def _block(dim, target, mults=(256, 128, 8)):
    """Largest tile <= target that divides `dim` and is a multiple of one of
    `mults` (tried in order); falls back to the full dimension (always legal)."""
    if dim <= target:
        return dim
    for mult in mults:
        t = (min(target, dim) // mult) * mult
        while t >= mult:
            if dim % t == 0:
                return t
            t -= mult
    return dim


def _erf(z):
    # Abramowitz & Stegun 7.1.26 polynomial erf (|abs err| < 1.5e-7); avoids
    # depending on a native erf lowering inside Mosaic.
    p = 0.3275911
    a1, a2, a3, a4, a5 = (0.254829592, -0.284496736, 1.421413741,
                          -1.453152027, 1.061405429)
    za = jnp.abs(z)
    t = 1.0 / (1.0 + p * za)
    poly = ((((a5 * t + a4) * t + a3) * t + a2) * t + a1) * t
    y = 1.0 - poly * jnp.exp(-za * za)
    return jnp.where(z >= 0, y, -y)


def _gelu(x):
    # exact (erf-based) GELU in f32, matching torch.nn.GELU()
    return 0.5 * x * (1.0 + _erf(x * 0.7071067811865476))


# ---------------------------------------------------------------------------
# kernel 1: tiled linear (+ optional GELU), bf16 operands, f32 accumulation
# ---------------------------------------------------------------------------
def _linear_kernel(x_ref, w_ref, b_ref, o_ref, acc_ref, *, apply_gelu):
    k = pl.program_id(2)

    @pl.when(k == 0)
    def _():
        acc_ref[...] = jnp.zeros_like(acc_ref)

    acc_ref[...] += jnp.dot(x_ref[...], w_ref[...],
                            preferred_element_type=jnp.float32)

    @pl.when(k == pl.num_programs(2) - 1)
    def _():
        y = acc_ref[...] + b_ref[...]          # f32 epilogue
        if apply_gelu:
            y = _gelu(y)
        o_ref[...] = y.astype(o_ref.dtype)


def linear(x, w, b, *, apply_gelu=False, out_dtype=jnp.bfloat16,
           tm=256, tn=512, tk=512):
    """y = x @ w + b (optionally GELU).  x:(M,K)  w:(K,N)  b:(N,) -> (M,N)."""
    M, K = x.shape
    K2, N = w.shape
    assert K == K2
    bm = _block(M, tm, (256, 8))
    bn = _block(N, tn, (256, 128))
    bk = _block(K, tk, (256, 128))
    kernel = functools.partial(_linear_kernel, apply_gelu=apply_gelu)
    return pl.pallas_call(
        kernel,
        out_shape=jax.ShapeDtypeStruct((M, N), out_dtype),
        grid_spec=pltpu.PrefetchScalarGridSpec(
            num_scalar_prefetch=0,
            grid=(M // bm, N // bn, K // bk),
            in_specs=[
                pl.BlockSpec((bm, bk), lambda i, j, k: (i, k)),
                pl.BlockSpec((bk, bn), lambda i, j, k: (k, j)),
                pl.BlockSpec((1, bn), lambda i, j, k: (0, j)),
            ],
            out_specs=pl.BlockSpec((bm, bn), lambda i, j, k: (i, j)),
            scratch_shapes=[pltpu.VMEM((bm, bn), jnp.float32)],
        ),
        compiler_params=pltpu.CompilerParams(
            dimension_semantics=("parallel", "parallel", "arbitrary")),
    )(x.astype(jnp.bfloat16), w.astype(jnp.bfloat16),
      b.reshape(1, N).astype(jnp.float32))


# ---------------------------------------------------------------------------
# kernel 2: fused RoPE + GELU -> Q / K latents
#   rotate_half(x) is computed as x @ R with R a signed permutation matrix
#   (runs on the otherwise-idle MXU, exact in bf16, no cross-lane relayout).
#   Content and rope parts are written with two lane-dense slice stores
#   (both 128-aligned at production sizes) instead of an in-kernel concat.
# ---------------------------------------------------------------------------
def _qk_build_kernel(cc_ref, cr_ref, cos_ref, sin_ref, rot_ref, o_ref, *, dcc):
    cc = cc_ref[0].astype(jnp.float32)                       # (ts, dcc)
    cr = cr_ref[0]                                           # (ts, dr) bf16
    rot = jnp.dot(cr, rot_ref[...],
                  preferred_element_type=jnp.float32)        # rotate_half, exact
    rope = cr.astype(jnp.float32) * cos_ref[...] + rot * sin_ref[...]
    o_ref[0, :, :dcc] = _gelu(cc).astype(o_ref.dtype)
    o_ref[0, :, dcc:] = _gelu(rope).astype(o_ref.dtype)


def build_qk(cc, cr, cos_f, sin_f, rot_mat, *, ts_target=512):
    """GELU(concat(cc, RoPE(cr))).  cc:(B,S,dcc)  cr:(B,S,dr)  cos/sin:(S,dr)."""
    B, S, dcc = cc.shape
    dr = cr.shape[-1]
    ts = _block(S, ts_target, (256, 128, 8))
    kernel = functools.partial(_qk_build_kernel, dcc=dcc)
    return pl.pallas_call(
        kernel,
        out_shape=jax.ShapeDtypeStruct((B, S, dcc + dr), jnp.bfloat16),
        grid_spec=pltpu.PrefetchScalarGridSpec(
            num_scalar_prefetch=0,
            grid=(B, S // ts),
            in_specs=[
                pl.BlockSpec((1, ts, dcc), lambda b, s: (b, s, 0)),
                pl.BlockSpec((1, ts, dr), lambda b, s: (b, s, 0)),
                pl.BlockSpec((ts, dr), lambda b, s: (s, 0)),
                pl.BlockSpec((ts, dr), lambda b, s: (s, 0)),
                pl.BlockSpec((dr, dr), lambda b, s: (0, 0)),
            ],
            out_specs=pl.BlockSpec((1, ts, dcc + dr), lambda b, s: (b, s, 0)),
        ),
        compiler_params=pltpu.CompilerParams(
            dimension_semantics=("parallel", "parallel")),
    )(cc.astype(jnp.bfloat16), cr.astype(jnp.bfloat16),
      cos_f.astype(jnp.float32), sin_f.astype(jnp.float32),
      rot_mat.astype(jnp.bfloat16))


# ---------------------------------------------------------------------------
# kernel 3: causal flash attention (online softmax), all heads per q tile
# ---------------------------------------------------------------------------
_NEG_BIG = -1e30  # finite "-inf": avoids NaNs in the online-softmax recurrence


def _attn_kernel(q_ref, k_ref, v_ref, o_ref, m_ref, l_ref, acc_ref,
                 *, scale, tq, tk, num_heads, head_dim):
    qi = pl.program_id(1)
    ki = pl.program_id(2)
    H, Dh = num_heads, head_dim

    @pl.when(ki == 0)
    def _():
        m_ref[...] = jnp.full_like(m_ref, _NEG_BIG)
        l_ref[...] = jnp.zeros_like(l_ref)
        acc_ref[...] = jnp.zeros_like(acc_ref)

    # only kv tiles intersecting the causal lower triangle contribute
    @pl.when(ki * tk <= qi * tq + (tq - 1))
    def _():
        q_tile = q_ref[0] * scale                              # (tq, H*Dh) bf16
        k_tile = k_ref[0]                                      # (tk, H*Dh)
        v_tile = v_ref[0]                                      # (tk, H*Dh)
        q_pos = qi * tq + lax.broadcasted_iota(jnp.int32, (tq, tk), 0)
        kv_pos = ki * tk + lax.broadcasted_iota(jnp.int32, (tq, tk), 1)
        valid = kv_pos <= q_pos                                # causal (triu, diag=1)

        for h in range(H):                                     # static unroll
            sl = slice(h * Dh, (h + 1) * Dh)
            qh = q_tile[:, sl]                                 # (tq, Dh)
            kh = k_tile[:, sl]                                 # (tk, Dh)
            vh = v_tile[:, sl]                                 # (tk, Dh)
            s = lax.dot_general(qh, kh, (((1,), (1,)), ((), ())),
                                preferred_element_type=jnp.float32)  # (tq, tk)
            s = jnp.where(valid, s, _NEG_BIG)

            m_prev = m_ref[h]                                  # (tq, 1)
            m_new = jnp.maximum(m_prev, s.max(axis=-1, keepdims=True))
            alpha = jnp.exp(m_prev - m_new)
            p = jnp.exp(s - m_new)
            p = jnp.where(valid, p, 0.0)   # guard: stays correct even if a
                                           # contributing tile were fully masked
            l_ref[h] = alpha * l_ref[h] + p.sum(axis=-1, keepdims=True)
            acc_ref[h] = alpha * acc_ref[h] + jnp.dot(
                p.astype(vh.dtype), vh, preferred_element_type=jnp.float32)
            m_ref[h] = m_new

    @pl.when(ki == pl.num_programs(2) - 1)
    def _():
        for h in range(H):
            inv = pl.reciprocal(l_ref[h], approx=True)
            o_ref[0, :, h * Dh:(h + 1) * Dh] = (
                acc_ref[h] * inv).astype(o_ref.dtype)


def causal_attention(q, k, v, *, num_heads, scale,
                     tq_target=512, tk_target=512):
    """q,k,v: (B, S, H*Dh) natural layout -> (B, S, H*Dh); per-head causal
    softmax(q k^T * scale) @ v.  No head transposes through HBM."""
    B, S, D = q.shape
    assert D % num_heads == 0
    Dh = D // num_heads
    tq = _block(S, tq_target, (256, 128, 8))
    tk = _block(S, tk_target, (256, 128, 8))
    kernel = functools.partial(_attn_kernel, scale=scale, tq=tq, tk=tk,
                               num_heads=num_heads, head_dim=Dh)

    # Clamp the kv block index so causally-skipped steps re-reference the
    # previous block -> the pipeliner elides ~half the K/V HBM reads.
    def kv_index(b, qi, ki):
        last = (qi * tq + tq - 1) // tk
        return (b, jnp.minimum(ki, last), 0)

    return pl.pallas_call(
        kernel,
        out_shape=jax.ShapeDtypeStruct((B, S, D), jnp.bfloat16),
        grid_spec=pltpu.PrefetchScalarGridSpec(
            num_scalar_prefetch=0,
            grid=(B, S // tq, S // tk),
            in_specs=[
                pl.BlockSpec((1, tq, D), lambda b, qi, ki: (b, qi, 0)),
                pl.BlockSpec((1, tk, D), kv_index),
                pl.BlockSpec((1, tk, D), kv_index),
            ],
            out_specs=pl.BlockSpec((1, tq, D), lambda b, qi, ki: (b, qi, 0)),
            scratch_shapes=[
                pltpu.VMEM((num_heads, tq, 1), jnp.float32),    # running max
                pltpu.VMEM((num_heads, tq, 1), jnp.float32),    # running denom
                pltpu.VMEM((num_heads, tq, Dh), jnp.float32),   # running numerator
            ],
        ),
        compiler_params=pltpu.CompilerParams(
            dimension_semantics=("parallel", "parallel", "arbitrary")),
    )(q.astype(jnp.bfloat16), k.astype(jnp.bfloat16), v.astype(jnp.bfloat16))


# ---------------------------------------------------------------------------
# RoPE tables + rotate_half signed-permutation matrix
# ---------------------------------------------------------------------------
def rope_tables(seq_len, d_rope):
    half = d_rope // 2
    inv_freq = 1.0 / (10000.0 ** (jnp.arange(0, d_rope, 2, dtype=jnp.float32)
                                  / d_rope))
    t = jnp.arange(seq_len, dtype=jnp.float32)
    freqs = t[:, None] * inv_freq[None, :]                  # (S, d_rope//2)
    emb = jnp.concatenate([freqs, freqs], axis=-1)          # (S, d_rope)
    # rotate_half(x) == x @ rot  with rot a signed permutation matrix
    idx = jnp.arange(half)
    rot = jnp.zeros((d_rope, d_rope), jnp.float32)
    rot = rot.at[idx + half, idx].set(-1.0)                 # out[:half] = -x[half:]
    rot = rot.at[idx, idx + half].set(1.0)                  # out[half:] =  x[:half]
    return jnp.cos(emb), jnp.sin(emb), rot


# ---------------------------------------------------------------------------
# full forward pass (mirrors MultiHeadAttention.forward)
# ---------------------------------------------------------------------------
def mla_forward(x, params, *, num_heads, d_rope):
    B, S, E = x.shape
    d_compr = params["C_V_w"].shape[0]
    head_dim = d_compr // num_heads
    scale = 1.0 / math.sqrt(head_dim)
    dcc = d_compr - d_rope

    xf = x.reshape(B * S, E).astype(jnp.bfloat16)

    # Fuse projections that share an input by concatenating weights along N.
    # (In production these fused weights would be pre-built once, not per call.)
    w_qkv = jnp.concatenate([params["C_Q_w"], params["C_KV_w"]], axis=1)
    b_qkv = jnp.concatenate([params["C_Q_b"], params["C_KV_b"]])
    g1 = linear(xf, w_qkv, b_qkv, apply_gelu=True)          # (M, 2*d_compr)
    cq, ckv = g1[:, :d_compr], g1[:, d_compr:]

    w_r = jnp.concatenate([params["C_Q_R_w"], params["C_K_R_w"]], axis=1)
    b_r = jnp.concatenate([params["C_Q_R_b"], params["C_K_R_b"]])
    g2 = linear(xf, w_r, b_r)                               # (M, 2*d_rope)
    cqr, ckr = g2[:, :d_rope], g2[:, d_rope:]

    cqc = linear(cq, params["C_Q_C_w"], params["C_Q_C_b"])  # (M, dcc)

    w_kv = jnp.concatenate([params["C_K_C_w"], params["C_V_w"]], axis=1)
    b_kv = jnp.concatenate([params["C_K_C_b"], params["C_V_b"]])
    g3 = linear(ckv, w_kv, b_kv)                            # (M, dcc + d_compr)
    ckc, vlat = g3[:, :dcc], g3[:, dcc:]

    cos_f, sin_f, rot = rope_tables(S, d_rope)
    Q = build_qk(cqc.reshape(B, S, dcc), cqr.reshape(B, S, d_rope),
                 cos_f, sin_f, rot)
    K = build_qk(ckc.reshape(B, S, dcc), ckr.reshape(B, S, d_rope),
                 cos_f, sin_f, rot)
    V = vlat.reshape(B, S, d_compr)

    # Heads are handled inside the attention kernel (natural (B,S,H*Dh) layout):
    # no split/merge transposes through HBM.
    o = causal_attention(Q, K, V, num_heads=num_heads, scale=scale)
    # TODO(synk): dropout on attention weights is omitted (p=0.0 by default);
    # for p>0 use pltpu.prng_seed/prng_random_bits to build the drop mask.
    out = linear(o.reshape(B * S, d_compr),
                 params["out_proj_w"], params["out_proj_b"],
                 out_dtype=jnp.float32)
    return out.reshape(B, S, E)


# ---------------------------------------------------------------------------
# parameter init (weights stored as (in, out), i.e. already transposed vs torch)
# ---------------------------------------------------------------------------
def init_params(key, embed_dim, num_heads, d_compr, d_rope):
    dims = {
        "C_Q": (embed_dim, d_compr),
        "C_Q_C": (d_compr, d_compr - d_rope),
        "C_Q_R": (embed_dim, d_rope),
        "C_KV": (embed_dim, d_compr),
        "C_K_R": (embed_dim, d_rope),
        "C_K_C": (d_compr, d_compr - d_rope),
        "C_V": (d_compr, d_compr),
        "out_proj": (d_compr, embed_dim),
    }
    params = {}
    for name, (din, dout) in dims.items():
        key, kw, kb = jax.random.split(key, 3)
        bound = 1.0 / math.sqrt(din)
        params[name + "_w"] = jax.random.uniform(kw, (din, dout), jnp.float32,
                                                 -bound, bound)
        params[name + "_b"] = jax.random.uniform(kb, (dout,), jnp.float32,
                                                 -bound, bound)
    return params


# ---------------------------------------------------------------------------
# pure-JAX reference mirroring the PyTorch module exactly (f32)
# ---------------------------------------------------------------------------
def reference_forward(x, params, *, num_heads, d_rope):
    B, S, _ = x.shape
    d_compr = params["C_V_w"].shape[0]
    head_dim = d_compr // num_heads
    scale = 1.0 / math.sqrt(head_dim)
    gelu = lambda z: jax.nn.gelu(z, approximate=False)
    lin = lambda z, n: z @ params[n + "_w"] + params[n + "_b"]

    cq = gelu(lin(x, "C_Q"))
    cqc = lin(cq, "C_Q_C")
    cqr = lin(x, "C_Q_R")
    ckv = gelu(lin(x, "C_KV"))
    ckr = lin(x, "C_K_R")
    ckc = lin(ckv, "C_K_C")

    inv_freq = 1.0 / (10000.0 ** (jnp.arange(0, d_rope, 2, dtype=jnp.float32)
                                  / d_rope))
    t = jnp.arange(S, dtype=jnp.float32)
    freqs = t[:, None] * inv_freq[None, :]
    emb = jnp.concatenate([freqs, freqs], axis=-1)[None]     # (1, S, d_rope)

    def rotate_half(z):
        z1, z2 = jnp.split(z, 2, axis=-1)
        return jnp.concatenate([-z2, z1], axis=-1)

    def apply_rope(z):
        return z * jnp.cos(emb) + rotate_half(z) * jnp.sin(emb)

    cqr = apply_rope(cqr)
    ckr = apply_rope(ckr)

    Q = gelu(jnp.concatenate([cqc, cqr], axis=-1))
    K = gelu(jnp.concatenate([ckc, ckr], axis=-1))
    V = lin(ckv, "C_V")

    def split_heads(z):
        return z.reshape(B, S, num_heads, head_dim).transpose(0, 2, 1, 3)

    q, k, v = split_heads(Q), split_heads(K), split_heads(V)
    scores = jnp.einsum("bhqd,bhkd->bhqk", q, k) * scale
    mask = jnp.triu(jnp.ones((S, S), dtype=bool), k=1)
    scores = jnp.where(mask[None, None], -jnp.inf, scores)
    w = jax.nn.softmax(scores, axis=-1)
    o = jnp.einsum("bhqk,bhkd->bhqd", w, v)
    o = o.transpose(0, 2, 1, 3).reshape(B, S, d_compr)
    return o @ params["out_proj_w"] + params["out_proj_b"]


# ---------------------------------------------------------------------------
if __name__ == "__main__":
    B, S = 2, 8
    embed_dim, num_heads = 32, 2
    d_compr, d_rope = 16, 8          # head_dim = 8, d_compr - d_rope = 8

    key = jax.random.PRNGKey(0)
    kx, kp = jax.random.split(key)
    x = jax.random.normal(kx, (B, S, embed_dim), jnp.float32)
    params = init_params(kp, embed_dim, num_heads, d_compr, d_rope)

    out = mla_forward(x, params, num_heads=num_heads, d_rope=d_rope)
    out = jax.block_until_ready(out)

    ref = reference_forward(x, params, num_heads=num_heads, d_rope=d_rope)
    assert out.shape == (B, S, embed_dim)
    # tolerance reflects bf16 matmul operands (f32 accumulation) vs f32 reference
    max_err = float(jnp.max(jnp.abs(out - ref)))
    assert jnp.allclose(out, ref, atol=5e-2, rtol=5e-2), f"mismatch: {max_err}"

    print("KERNEL_OK")
</pallas_src>

<mosaic_0001>
module attributes {stable_mosaic.version = 11 : i64} {
  func.func @_linear_kernel(%arg0: i32, %arg1: i32, %arg2: i32, %arg3: memref<16x32xbf16, #tpu.memory_space<vmem>>, %arg4: memref<32x32xbf16, #tpu.memory_space<vmem>>, %arg5: memref<1x32xf32, #tpu.memory_space<vmem>>, %arg6: memref<16x32xbf16, #tpu.memory_space<vmem>>, %arg7: memref<16x32xf32, #tpu.memory_space<vmem>>) attributes {dimension_semantics = [#tpu.dimension_semantics<parallel>, #tpu.dimension_semantics<parallel>, #tpu.dimension_semantics<arbitrary>], iteration_bounds = array<i64: 1, 1, 1>, scalar_prefetch = 0 : i64, scratch_operands = 1 : i64, tpu.core_type = #tpu.core_type<tc>, window_params = [{transform_indices = @transform_0, window_bounds = array<i64: 16, 32>}, {transform_indices = @transform_1, window_bounds = array<i64: 32, 32>}, {transform_indices = @transform_2, window_bounds = array<i64: 1, 32>}, {transform_indices = @transform_3, window_bounds = array<i64: 16, 32>}]} {
    %c0_i32 = arith.constant 0 : i32
    %0 = arith.cmpi eq, %arg2, %c0_i32 : i32
    %1 = arith.extui %0 : i1 to i32
    %c0_i32_0 = arith.constant 0 : i32
    %2 = arith.cmpi ne, %1, %c0_i32_0 : i32
    scf.if %2 {
      %cst_10 = arith.constant 0.000000e+00 : f32
      %12 = vector.broadcast %cst_10 : f32 to vector<16x32xf32>
      %c0_11 = arith.constant 0 : index
      %c0_12 = arith.constant 0 : index
      %13 = vector.load %arg7[%c0_11, %c0_12] : memref<16x32xf32, #tpu.memory_space<vmem>>, vector<16x32xf32>
      tpu.vector_store %arg7[%c0_11, %c0_12], %12 {strides = array<i32>} : memref<16x32xf32, #tpu.memory_space<vmem>>, vector<16x32xf32>,
    } else {
    }
    %c0 = arith.constant 0 : index
    %c0_1 = arith.constant 0 : index
    %3 = vector.load %arg7[%c0, %c0_1] : memref<16x32xf32, #tpu.memory_space<vmem>>, vector<16x32xf32>
    %c0_2 = arith.constant 0 : index
    %c0_3 = arith.constant 0 : index
    %4 = vector.load %arg3[%c0_2, %c0_3] : memref<16x32xbf16, #tpu.memory_space<vmem>>, vector<16x32xbf16>
    %c0_4 = arith.constant 0 : index
    %c0_5 = arith.constant 0 : index
    %5 = vector.load %arg4[%c0_4, %c0_5] : memref<32x32xbf16, #tpu.memory_space<vmem>>, vector<32x32xbf16>
    %cst = arith.constant dense<0.000000e+00> : vector<16x32xf32>
    %6 = tpu.matmul %4, %5, %cst {dimension_numbers = #tpu.dot_dimension_numbers<[1], [0], [0], [1], [0, 0, 1, 1], [], []>} : vector<16x32xbf16>, vector<32x32xbf16>, vector<16x32xf32> -> vector<16x32xf32>
    %7 = arith.addf %3, %6 : vector<16x32xf32>
    %c0_6 = arith.constant 0 : index
    %c0_7 = arith.constant 0 : index
    %8 = vector.load %arg7[%c0_6, %c0_7] : memref<16x32xf32, #tpu.memory_space<vmem>>, vector<16x32xf32>
    tpu.vector_store %arg7[%c0_6, %c0_7], %7 {strides = array<i32>} : memref<16x32xf32, #tpu.memory_space<vmem>>, vector<16x32xf32>,
    %c0_i32_8 = arith.constant 0 : i32
    %9 = arith.cmpi eq, %arg2, %c0_i32_8 : i32
    %10 = arith.extui %9 : i1 to i32
    %c0_i32_9 = arith.constant 0 : i32
    %11 = arith.cmpi ne, %10, %c0_i32_9 : i32
    scf.if %11 {
      %c0_10 = arith.constant 0 : index
      %c0_11 = arith.constant 0 : index
      %12 = vector.load %arg7[%c0_10, %c0_11] : memref<16x32xf32, #tpu.memory_space<vmem>>, vector<16x32xf32>
      %c0_12 = arith.constant 0 : index
      %c0_13 = arith.constant 0 : index
      %13 = vector.load %arg5[%c0_12, %c0_13] : memref<1x32xf32, #tpu.memory_space<vmem>>, vector<1x32xf32>
      %14 = vector.broadcast %13 : vector<1x32xf32> to vector<16x32xf32>
      %15 = arith.addf %12, %14 : vector<16x32xf32>
      %cst_14 = arith.constant 5.000000e-01 : f32
      %16 = vector.broadcast %cst_14 : f32 to vector<16x32xf32>
      %17 = arith.mulf %16, %15 : vector<16x32xf32>
      %cst_15 = arith.constant 0.707106769 : f32
      %18 = vector.broadcast %cst_15 : f32 to vector<16x32xf32>
      %19 = arith.mulf %15, %18 : vector<16x32xf32>
      %20 = math.absf %19 : vector<16x32xf32>
      %cst_16 = arith.constant 0.327591091 : f32
      %21 = vector.broadcast %cst_16 : f32 to vector<16x32xf32>
      %22 = arith.mulf %21, %20 : vector<16x32xf32>
      %cst_17 = arith.constant 1.000000e+00 : f32
      %23 = vector.broadcast %cst_17 : f32 to vector<16x32xf32>
      %24 = arith.addf %23, %22 : vector<16x32xf32>
      %cst_18 = arith.constant 1.000000e+00 : f32
      %25 = vector.broadcast %cst_18 : f32 to vector<16x32xf32>
      %26 = arith.divf %25, %24 : vector<16x32xf32>
      %cst_19 = arith.constant 1.06140542 : f32
      %27 = vector.broadcast %cst_19 : f32 to vector<16x32xf32>
      %28 = arith.mulf %27, %26 : vector<16x32xf32>
      %cst_20 = arith.constant -1.45315206 : f32
      %29 = vector.broadcast %cst_20 : f32 to vector<16x32xf32>
      %30 = arith.addf %28, %29 : vector<16x32xf32>
      %31 = arith.mulf %30, %26 : vector<16x32xf32>
      %cst_21 = arith.constant 1.42141378 : f32
      %32 = vector.broadcast %cst_21 : f32 to vector<16x32xf32>
      %33 = arith.addf %31, %32 : vector<16x32xf32>
      %34 = arith.mulf %33, %26 : vector<16x32xf32>
      %cst_22 = arith.constant -0.284496725 : f32
      %35 = vector.broadcast %cst_22 : f32 to vector<16x32xf32>
      %36 = arith.addf %34, %35 : vector<16x32xf32>
      %37 = arith.mulf %36, %26 : vector<16x32xf32>
      %cst_23 = arith.constant 0.254829586 : f32
      %38 = vector.broadcast %cst_23 : f32 to vector<16x32xf32>
      %39 = arith.addf %37, %38 : vector<16x32xf32>
      %40 = arith.mulf %39, %26 : vector<16x32xf32>
      %cst_24 = arith.constant 0.000000e+00 : f32
      %41 = vector.broadcast %cst_24 : f32 to vector<16x32xf32>
      %42 = arith.subf %41, %20 : vector<16x32xf32>
      %43 = arith.mulf %42, %20 : vector<16x32xf32>
      %44 = math.exp %43 : vector<16x32xf32>
      %45 = arith.mulf %40, %44 : vector<16x32xf32>
      %cst_25 = arith.constant 1.000000e+00 : f32
      %46 = vector.broadcast %cst_25 : f32 to vector<16x32xf32>
      %47 = arith.subf %46, %45 : vector<16x32xf32>
      %cst_26 = arith.constant 0.000000e+00 : f32
      %48 = vector.broadcast %cst_26 : f32 to vector<16x32xf32>
      %49 = arith.cmpf oge, %19, %48 : vector<16x32xf32>
      %cst_27 = arith.constant 0.000000e+00 : f32
      %50 = vector.broadcast %cst_27 : f32 to vector<16x32xf32>
      %51 = arith.subf %50, %47 : vector<16x32xf32>
      %52 = arith.select %49, %47, %51 : vector<16x32xi1>, vector<16x32xf32>
      %cst_28 = arith.constant 1.000000e+00 : f32
      %53 = vector.broadcast %cst_28 : f32 to vector<16x32xf32>
      %54 = arith.addf %53, %52 : vector<16x32xf32>
      %55 = arith.mulf %17, %54 : vector<16x32xf32>
      %56 = arith.truncf %55 : vector<16x32xf32> to vector<16x32xbf16>
      %c0_29 = arith.constant 0 : index
      %c0_30 = arith.constant 0 : index
      %57 = vector.load %arg6[%c0_29, %c0_30] : memref<16x32xbf16, #tpu.memory_space<vmem>>, vector<16x32xbf16>
      tpu.vector_store %arg6[%c0_29, %c0_30], %56 {strides = array<i32>} : memref<16x32xbf16, #tpu.memory_space<vmem>>, vector<16x32xbf16>,
    } else {
    }
    return
  }
  func.func @transform_0(%arg0: i32, %arg1: i32, %arg2: i32) -> (i32, i32) {
    %c0_i32 = arith.constant 0 : i32
    return %arg0, %arg2 : i32, i32
  }
  func.func @transform_1(%arg0: i32, %arg1: i32, %arg2: i32) -> (i32, i32) {
    %c0_i32 = arith.constant 0 : i32
    return %arg2, %arg1 : i32, i32
  }
  func.func @transform_2(%arg0: i32, %arg1: i32, %arg2: i32) -> (i32, i32) {
    %c0_i32 = arith.constant 0 : i32
    %c0_i32_0 = arith.constant 0 : i32
    return %c0_i32, %arg1 : i32, i32
  }
  func.func @transform_3(%arg0: i32, %arg1: i32, %arg2: i32) -> (i32, i32) {
    %c0_i32 = arith.constant 0 : i32
    return %arg0, %arg1 : i32, i32
  }
}

</mosaic_0001>

<bundles_post_ra>
// kernel: tpu_custom_call.1
= control target key start
LH: loop header
LB: loop body
LE: loop exit
PB: predicated region body
PF: predicated region fallthrough
CT: control target
= control target key end

     0   :  { %8 = vsyncpa [#allocation4], 0  ;;  %s379_s0 = inlined_call_operand.hbm [shape: bf16[16,32], index: 0, kind: input, shape index: {}]   ;;  %s380_s1 = inlined_call_operand.hbm [shape: bf16[32,32], index: 1, kind: input, shape index: {}]   ;;  %s381_s2 = inlined_call_operand.vmem [shape: f32[1,32], index: 2, kind: input, shape index: {}]   ;;  %s382_s3 = inlined_call_operand.hbm [shape: bf16[16,32], index: 3, kind: output, shape index: {}]  }
   0x1   :  { %9 = vsyncpa [#allocation7], 0 }
   0x2   :  { %10 = vsyncpa [#allocation5], 0  ;;  %s326_s12 = smov [#allocation3]  }
   0x3   :  { %s16_s13 = sshll.u32 %s326_s12, 4  ;;  %s17_s13 = int_to_ptr.vmem [resolvable:$true] %s16_s13 }
   0x4   :  { %s268_s14 = scalar_lea.vmem %s17_s13, 128  ;;  %p273_p1 = scmp.lt.s32.totalorder %s17_s13, %s17_s13 }
   0x5   :  { %p269_p0 = scmp.ne.s32.totalorder %s17_s13, %s268_s14  ;;  %p274_p2 = scmp.lt.s32.totalorder %s268_s14, %s268_s14 }
   0x7   :  { %p275_p3 = por %p274_p2, %p273_p1 }
   0x9   :  { %p276_p4 = pnand %p275_p3, %p269_p0 }
   0xb   :  { %279 = shalt.err (!%p276_p4)
}
   0xc   :  { %s327_s15 = smov 64   ;;  %s328_s16 = smov 4  }
   0xd   :  { %22 = dma.hbm_to_vmem [thread:$0]  %s379_s0, 128, %s17_s13, [#allocation4], %s327_s15, %s327_s15, %s328_s16  }
   0xe   :  { %s329_s19 = smov [#allocation6]  }
   0xf   :  { %s28_s20 = sshll.u32 %s329_s19, 4  ;;  %s29_s20 = int_to_ptr.vmem [resolvable:$true] %s28_s20 }
  0x10   :  { %s288_s21 = scalar_lea.vmem %s29_s20, 256  ;;  %p293_p6 = scmp.lt.s32.totalorder %s29_s20, %s29_s20 }
  0x11   :  { %p289_p5 = scmp.ne.s32.totalorder %s29_s20, %s288_s21  ;;  %p294_p7 = scmp.lt.s32.totalorder %s288_s21, %s288_s21 }
  0x13   :  { %p295_p8 = por %p294_p7, %p293_p6 }
  0x15   :  { %p296_p9 = pnand %p295_p8, %p289_p5 }
  0x17   :  { %299 = shalt.err (!%p296_p9)
}
  0x18   :  { %34 = dma.hbm_to_vmem [thread:$0]  %s380_s1, 256, %s29_s20, [#allocation7], %s327_s15, %s327_s15, %s328_s16  }
  0x19   :  { %320 = dma.done.wait [#allocation4], 128  }
  0x1a   :  { %321 = vsyncadd [#allocation4], 4294967168 }
  0x1b   :  { %322 = dma.done.wait [#allocation7], 256  }
  0x1c   :  { %323 = vsyncadd [#allocation7], 4294967040  ;;  %vm48_vm0 = vcmask 261120   ;;  %v330_v0 = vmov 0.0   ;;  %vm331_vm1 = vmmov 0   ;;  %v249_v1 = vld [vmem:[#allocation6 + $0x8] sm:$0xff]  }
  0x1d   :  { %234 = vmatprep.subr.bf16.mxu0 %v330_v0  ;;  %238 = vmatprep.mubr.msk.bf16.mxu0 %vm331_vm1, %v330_v0  ;;  %49 = vst.msk [vmem:[#allocation2] sm:$0xff] %vm48_vm0, %v330_v0  ;;  %50 = vst.msk [vmem:[#allocation2 + $0x8] sm:$0xff] %vm48_vm0, %v330_v0  ;;  %v250_v2 = vld [vmem:[#allocation6] sm:$0xff]   ;;  %v251_v3 = vld [vmem:[#allocation3] sm:$0xff]   ;;  %vm201_vm4 = vcmask 257024  }
  0x1e   :  { %235 = vmatpush3.bf16.msra.mxu0 %v249_v1  ;;  %v226_v12 = vld [vmem:[%s381_s2] ss:$0 sm:$0xff]  ;;  %s332_s2 = smov [#allocation8]  }
  0x1f   :  { %236 = vmatprep.subr.bf16.mxu0 %v330_v0  ;;  %s209_s24 = sshll.u32 %s332_s2, 4  ;;  %s210_s24 = int_to_ptr.vmem [resolvable:$true] %s209_s24 }
  0x20   :  { %s300_s25 = scalar_lea.vmem %s210_s24, 128  ;;  %p305_p11 = scmp.lt.s32.totalorder %s210_s24, %s210_s24 }
  0x21   :  { %p301_p10 = scmp.ne.s32.totalorder %s210_s24, %s300_s25  ;;  %p306_p12 = scmp.lt.s32.totalorder %s300_s25, %s300_s25 }
  0x22   :  { %237 = vmatpush3.bf16.msra.mxu0 %v250_v2 }
  0x23   :  { %p307_p13 = por %p306_p12, %p305_p11 }
  0x24   :  { %v51_v4 = vld [vmem:[#allocation2] sm:$0xff]  ;;  %v52_v8 = vld [vmem:[#allocation2 + $0x8] sm:$0xff] }
  0x25   :  { %239 = vmatmul.mubr.msk.bf16.vlgmr.msra.gmra.mxu0 %vm48_vm0, %v251_v3  ;;  %p308_p0 = pnand %p307_p13, %p301_p10 }
  0xe5   :  { %v114_v5 = vpop.f32.mrf.mxu0 }
  0xe6   :  { %v121_v6 = vadd.f32 %v114_v5, %v51_v4 }
  0xe7   :  { %v240_v7 = vpop.f32.mrf.mxu0 }
  0xe8   :  { %123 = vst.msk [vmem:[#allocation2] sm:$0xff] %vm48_vm0, %v121_v6 }
  0xe9   :  { %v117_v9 = vpop.f32.mrf.mxu0 }
  0xea   :  { %v122_v10 = vadd.f32 %v117_v9, %v52_v8 }
  0xeb   :  { %v241_v11 = vpop.f32.mrf.mxu0 }
  0xec   :  { %124 = vst.msk [vmem:[#allocation2 + $0x8] sm:$0xff] %vm48_vm0, %v122_v10 }
  0xef   :  { %v128_v13 = vld [vmem:[#allocation2] sm:$0xff] }
  0xf0   :  { %v137_v14 = vadd.f32 %v226_v12, %v128_v13 }
  0xf2   :  { %v141_v15 = vmul.f32 0.70710677, %v137_v14  ;;  %v139_v59 = vmul.f32 0.5, %v137_v14 }
  0xf3   :  { %v129_v16 = vld [vmem:[#allocation2 + $0x8] sm:$0xff] }
  0xf4   :  { %v138_v17 = vadd.f32 %v226_v12, %v129_v16  ;;  %v143_v18 = vand.u32 2147483647, %v141_v15  ;;  %vm183_vm2 = vcmp.ge.f32.partialorder %v141_v15, 0.0 }
  0xf6   :  { %v142_v19 = vmul.f32 0.70710677, %v138_v17  ;;  %v145_v20 = vmul.f32 0.3275911, %v143_v18  ;;  %v171_v25 = vsub.f32 0.0, %v143_v18  ;;  %v140_v0 = vmul.f32 0.5, %v138_v17 }
  0xf8   :  { %v144_v21 = vand.u32 2147483647, %v142_v19  ;;  %v147_v22 = vadd.f32 1.0, %v145_v20  ;;  %v173_v27 = vmul.f32 %v171_v25, %v143_v18  ;;  %vm184_vm3 = vcmp.ge.f32.partialorder %v142_v19, 0.0 }
  0xfa   :  { %v146_v23 = vmul.f32 0.3275911, %v144_v21  ;;  %252 = vrcp.f32 %v147_v22  ;;  %v172_v26 = vsub.f32 0.0, %v144_v21  ;;  %v175_v31 = vmul.f32 1.442695, %v173_v27 }
  0xfc   :  { %v148_v24 = vadd.f32 1.0, %v146_v23  ;;  %v174_v30 = vmul.f32 %v172_v26, %v144_v21 }
  0xfe   :  { %254 = vrcp.f32 %v148_v24  ;;  %v177_v36 = vmul.f32 1.442695, %v174_v30 }
  0xff   :  { %256 = vpow2.f32 %v175_v31 }
 0x100   :  { %258 = vpow2.f32 %v177_v36 }
 0x107   :  { %v253_v28 = vpop.eup %252 }
 0x108   :  { %v153_v29 = vmul.f32 1.0614054, %v253_v28 }
 0x10a   :  { %v155_v32 = vadd.f32 -1.4531521, %v153_v29 }
 0x10b   :  { %v255_v33 = vpop.eup %254 }
 0x10c   :  { %v154_v34 = vmul.f32 1.0614054, %v255_v33  ;;  %v157_v35 = vmul.f32 %v253_v28, %v155_v32  ;;  %v257_v49 = vpop.eup %256 }
 0x10d   :  { %v259_v54 = vpop.eup %258 }
 0x10e   :  { %v156_v37 = vadd.f32 -1.4531521, %v154_v34  ;;  %v159_v38 = vadd.f32 1.4214138, %v157_v35 }
 0x110   :  { %v158_v39 = vmul.f32 %v255_v33, %v156_v37  ;;  %v161_v40 = vmul.f32 %v253_v28, %v159_v38 }
 0x112   :  { %v160_v41 = vadd.f32 1.4214138, %v158_v39  ;;  %v163_v42 = vadd.f32 -0.28449672, %v161_v40 }
 0x114   :  { %v162_v43 = vmul.f32 %v255_v33, %v160_v41  ;;  %v165_v44 = vmul.f32 %v253_v28, %v163_v42 }
 0x116   :  { %v164_v45 = vadd.f32 -0.28449672, %v162_v43  ;;  %v167_v46 = vadd.f32 0.2548296, %v165_v44 }
 0x118   :  { %v166_v47 = vmul.f32 %v255_v33, %v164_v45  ;;  %v169_v48 = vmul.f32 %v253_v28, %v167_v46 }
 0x11a   :  { %v168_v50 = vadd.f32 0.2548296, %v166_v47  ;;  %v179_v51 = vmul.f32 %v257_v49, %v169_v48 }
 0x11c   :  { %v170_v52 = vmul.f32 %v255_v33, %v168_v50  ;;  %v181_v53 = vsub.f32 1.0, %v179_v51 }
 0x11e   :  { %v180_v55 = vmul.f32 %v259_v54, %v170_v52  ;;  %v185_v56 = vsub.f32 0.0, %v181_v53 }
 0x120   :  { %v182_v57 = vsub.f32 1.0, %v180_v55  ;;  %v187_v58 = vsel %vm183_vm2, %v181_v53, %v185_v56 }
 0x121   :  { %v189_v60 = vadd.f32 1.0, %v187_v58 }
 0x122   :  { %v186_v61 = vsub.f32 0.0, %v182_v57 }
 0x123   :  { %v191_v62 = vmul.f32 %v189_v60, %v139_v59 }
 0x124   :  { %v188_v63 = vsel %vm184_vm3, %v182_v57, %v186_v61 }
 0x125   :  { %v190_v1 = vadd.f32 1.0, %v188_v63  ;;  %v229_v2 = vpack.c.bf16 %v191_v62, %v191_v62 }
 0x127   :  { %v192_v3 = vmul.f32 %v190_v1, %v140_v0  ;;  %202 = vst.msk [vmem:[#allocation8] sm:$0xf] %vm201_vm4, %v229_v2 }
 0x129   :  { %v230_v4 = vpack.c.bf16 %v192_v3, %v192_v3 }
 0x12b   :  { %203 = vst.msk [vmem:[#allocation8 + $0x4] sm:$0xf] %vm201_vm4, %v230_v4 }
 0x12c   :  { %311 = shalt.err (!%p308_p0)
}
 0x12d   :  { %215 = dma.vmem_to_hbm [thread:$0]  %s210_s24, 128, %s382_s3, [#allocation5], %s327_s15, %s327_s15, %s328_s16  }
 0x12e   :  { %324 = dma.done.wait [#allocation5], 128  }
 0x12f   :  { %325 = vsyncadd [#allocation5], 4294967168 }
 0x130   :  { %219 = vsyncpa [#allocation4], 1 }
 0x131   :  { %220 = vsyncpa [#allocation7], 1 }
 0x132   :  { %221 = vsyncpa [#allocation5], 1 }

</bundles_post_ra>
